<compile_context>
chip_gen: v7x
topology: tpu7x:2x2x1
jax: 0.10.0
libtpu: 0.0.40
codegen_flags: <defaults>
</compile_context>

<pallas_src>
import functools

import jax
import jax.numpy as jnp
from jax import lax
from jax.experimental import pallas as pl
from jax.experimental.pallas import tpu as pltpu


# ---------------------------------------------------------------------------
# Parameter setup (plain-JAX glue): the sinusoidal table from __init__.
# ---------------------------------------------------------------------------
def make_positional_table(num_hiddens: int, max_len: int = 1000,
                          dtype=jnp.float32) -> jnp.ndarray:
    pos = jnp.arange(max_len, dtype=jnp.float32).reshape(-1, 1)
    div = jnp.power(
        10000.0,
        jnp.arange(0, num_hiddens, 2, dtype=jnp.float32) / num_hiddens)
    X = pos / div                                   # (max_len, num_hiddens//2)
    P = jnp.zeros((1, max_len, num_hiddens), dtype=jnp.float32)
    P = P.at[:, :, 0::2].set(jnp.sin(X))
    P = P.at[:, :, 1::2].set(jnp.cos(X))
    return P.astype(dtype)


# ---------------------------------------------------------------------------
# Pallas kernel: y = dropout(x + P) for one (bb, tile_rows, 128) block.
# ---------------------------------------------------------------------------
def pe_dropout_kernel(seed_ref, x_ref, p_ref, o_ref, *,
                      dropout_p: float, apply_dropout: bool,
                      use_hw_prng: bool):
    if apply_dropout and dropout_p >= 1.0:
        # PyTorch dropout with p=1 zeroes everything.
        o_ref[...] = jnp.zeros_like(o_ref)
        return

    # Add / select / scale in f32; single cast at the store (p_ref broadcasts
    # over the batch-block dim).
    y = x_ref[...].astype(jnp.float32) + p_ref[...].astype(jnp.float32)

    if apply_dropout and dropout_p > 0.0:
        keep_prob = 1.0 - dropout_p
        # keep iff bits < keep_prob * 2^32 (clamped so keep_prob ~ 1 never wraps)
        threshold = jnp.uint32(min(int(round(keep_prob * 4294967296.0)),
                                   4294967295))
        # Linear block id: unique per grid step -> independent masks per block.
        blk = pl.program_id(1) * pl.num_programs(0) + pl.program_id(0)

        if use_hw_prng:
            # Hardware PRNG, reseeded per block: deterministic for a fixed
            # tiling, independent of grid-axis execution order (both axes can
            # stay "parallel"), and only ~3-4 VALU ops/vreg on the compare/
            # select/scale path.
            pltpu.prng_seed(seed_ref[0], blk)
            bits = pltpu.prng_random_bits(y.shape)
            if bits.dtype != jnp.uint32:
                bits = pltpu.bitcast(bits, jnp.uint32)
        else:
            # Portable counter-based hash fallback (interpret / non-TPU path).
            # TODO(synk): PyTorch's dropout RNG stream cannot be reproduced
            # bit-exactly; this is a deterministic, well-mixed substitute.
            bb, rows, lanes = y.shape
            local = (lax.broadcasted_iota(jnp.uint32, y.shape, 0)
                     * jnp.uint32(rows * lanes)
                     + lax.broadcasted_iota(jnp.uint32, y.shape, 1)
                     * jnp.uint32(lanes)
                     + lax.broadcasted_iota(jnp.uint32, y.shape, 2))
            ctr = (blk.astype(jnp.uint32) * jnp.uint32(bb * rows * lanes)
                   + local)
            h = ctr ^ (seed_ref[0].astype(jnp.uint32) * jnp.uint32(0x9E3779B9))
            h = h ^ (h >> 16)
            h = h * jnp.uint32(0x21F0AAAD)
            h = h ^ (h >> 15)
            h = h * jnp.uint32(0x735A2D97)
            h = h ^ (h >> 15)
            bits = h

        keep = bits < threshold
        scale = jnp.float32(1.0 / keep_prob)
        y = jnp.where(keep, y * scale, jnp.float32(0.0))

    o_ref[...] = y.astype(o_ref.dtype)


# ---------------------------------------------------------------------------
# Wrapper
# ---------------------------------------------------------------------------
def positional_encoding_forward(x, P, *, dropout_p: float = 0.1,
                                training: bool = True, seed: int = 0,
                                row_tile: int = 2048, use_hw_prng=None):
    """y = dropout(x + P[:, :T, :]) with inverted-dropout scaling."""
    B, T, H = x.shape
    if use_hw_prng is None:
        use_hw_prng = (jax.default_backend() == "tpu")

    itemsize = jnp.dtype(x.dtype).itemsize
    lanes = 128
    total = T * H
    pad = (-total) % lanes                  # lane-dense: pad flat axis to x128
    padded_total = total + pad
    rows = padded_total // lanes

    xf = x.reshape(B, total)
    pf = P[:, :T, :].astype(x.dtype).reshape(1, total)   # small one-time cast
    if pad:
        xf = jnp.pad(xf, ((0, 0), (0, pad)))
        pf = jnp.pad(pf, ((0, 0), (0, pad)))
    x2 = xf.reshape(B, rows, lanes)
    p2 = pf.reshape(1, rows, lanes)

    # Tile selection: aim for ~1 MiB per x/out block.
    if rows > row_tile:
        tile_rows = row_tile                # multiple of 8 by construction
        bb = 1
    else:
        tile_rows = rows                    # full dim -> (8,128) rule satisfied
        per_batch_bytes = rows * lanes * itemsize
        bb = int(max(1, min(B, (1 << 20) // max(per_batch_bytes, 1))))

    n_row_blocks = pl.cdiv(rows, tile_rows)
    n_batch_blocks = pl.cdiv(B, bb)

    # Explicit VMEM budget: double-buffered x + out + P blocks, plus headroom.
    x_block_bytes = bb * tile_rows * lanes * itemsize
    p_block_bytes = tile_rows * lanes * itemsize
    vmem_needed = 2 * (2 * x_block_bytes + p_block_bytes) + (2 << 20)
    vmem_limit = int(min(max(vmem_needed, 16 << 20), 64 << 20))

    seed_arr = jnp.array([seed], dtype=jnp.int32)
    cost = pl.CostEstimate(
        flops=B * total,
        transcendentals=0,
        bytes_accessed=(2 * B * padded_total + padded_total) * itemsize)

    kernel = functools.partial(pe_dropout_kernel,
                               dropout_p=float(dropout_p),
                               apply_dropout=bool(training),
                               use_hw_prng=bool(use_hw_prng))

    out = pl.pallas_call(
        kernel,
        out_shape=jax.ShapeDtypeStruct((B, rows, lanes), x.dtype),
        grid_spec=pltpu.PrefetchScalarGridSpec(
            num_scalar_prefetch=1,                   # seed lands in SMEM
            # Row tiles outer, batch innermost: P's block index ignores b, so
            # its tile stays VMEM-resident across the inner batch loop.
            grid=(n_row_blocks, n_batch_blocks),
            in_specs=[
                pl.BlockSpec((bb, tile_rows, lanes), lambda r, b, seed: (b, r, 0)),  # x
                pl.BlockSpec((1, tile_rows, lanes), lambda r, b, seed: (0, r, 0)),   # P
            ],
            out_specs=pl.BlockSpec((bb, tile_rows, lanes),
                                   lambda r, b, seed: (b, r, 0)),
        ),
        compiler_params=pltpu.CompilerParams(
            # Per-block PRNG reseed -> no sequential state -> both axes
            # parallel (sharded across the two TensorCores on v7x).
            dimension_semantics=("parallel", "parallel"),
            vmem_limit_bytes=vmem_limit),
        cost_estimate=cost,
    )(seed_arr, x2, p2)

    out = out.reshape(B, padded_total)
    if pad:
        out = out[:, :total]
    return out.reshape(B, T, H)


# ---------------------------------------------------------------------------
# Demo / self-test
# ---------------------------------------------------------------------------
if __name__ == "__main__":
    num_hiddens = 32
    max_len = 1000
    dropout_p = 0.1
    B, T = 2, 8

    key = jax.random.PRNGKey(0)
    x = jax.random.normal(key, (B, T, num_hiddens), dtype=jnp.float32)

    P = make_positional_table(num_hiddens, max_len)
    ref = x + P[:, :T, :]

    # Eval mode: dropout is identity -> exact match against plain JAX.
    y_eval = jax.block_until_ready(
        positional_encoding_forward(x, P, dropout_p=dropout_p, training=False))
    assert jnp.allclose(y_eval, ref, atol=1e-6), "eval-mode mismatch"

    # Training mode: inverted dropout with hardware-PRNG mask (per-block seed).
    y_train = jax.block_until_ready(
        positional_encoding_forward(x, P, dropout_p=dropout_p,
                                    training=True, seed=1234))
    keep_prob = 1.0 - dropout_p
    scaled = ref / keep_prob
    is_kept = jnp.isclose(y_train, scaled, atol=1e-5)
    is_dropped = (y_train == 0)
    assert bool(jnp.all(is_kept | is_dropped)), "train-mode values mismatch"
    frac_dropped = float(jnp.mean((~is_kept).astype(jnp.float32)))
    assert 0.0 < frac_dropped < 0.4, f"implausible drop fraction {frac_dropped}"

    print("KERNEL_OK")
</pallas_src>

<mosaic_0001>
module attributes {stable_mosaic.version = 11 : i64} {
  func.func @pe_dropout_kernel(%arg0: i32, %arg1: i32, %arg2: memref<1xi32, #tpu.memory_space<smem>>, %arg3: memref<2x2x128xf32, #tpu.memory_space<vmem>>, %arg4: memref<1x2x128xf32, #tpu.memory_space<vmem>>, %arg5: memref<2x2x128xf32, #tpu.memory_space<vmem>>) attributes {dimension_semantics = [#tpu.dimension_semantics<parallel>, #tpu.dimension_semantics<parallel>], iteration_bounds = array<i64: 1, 1>, scalar_prefetch = 1 : i64, scratch_operands = 0 : i64, tpu.core_type = #tpu.core_type<tc>, window_params = [{transform_indices = @transform_0, window_bounds = array<i64: 2, 2, 128>}, {transform_indices = @transform_1, window_bounds = array<i64: 1, 2, 128>}, {transform_indices = @transform_2, window_bounds = array<i64: 2, 2, 128>}]} {
    %c0 = arith.constant 0 : index
    %c0_0 = arith.constant 0 : index
    %c0_1 = arith.constant 0 : index
    %0 = vector.load %arg3[%c0, %c0_0, %c0_1] : memref<2x2x128xf32, #tpu.memory_space<vmem>>, vector<2x2x128xf32>
    %c0_2 = arith.constant 0 : index
    %c0_3 = arith.constant 0 : index
    %c0_4 = arith.constant 0 : index
    %1 = vector.load %arg4[%c0_2, %c0_3, %c0_4] : memref<1x2x128xf32, #tpu.memory_space<vmem>>, vector<1x2x128xf32>
    %2 = vector.broadcast %1 : vector<1x2x128xf32> to vector<2x2x128xf32>
    %3 = arith.addf %0, %2 : vector<2x2x128xf32>
    %c0_5 = arith.constant 0 : index
    %c0_6 = arith.constant 0 : index
    %c0_7 = arith.constant 0 : index
    %4 = vector.load %arg5[%c0_5, %c0_6, %c0_7] : memref<2x2x128xf32, #tpu.memory_space<vmem>>, vector<2x2x128xf32>
    tpu.vector_store %arg5[%c0_5, %c0_6, %c0_7], %3 {strides = array<i32>} : memref<2x2x128xf32, #tpu.memory_space<vmem>>, vector<2x2x128xf32>,
    return
  }
  func.func @transform_0(%arg0: i32, %arg1: i32, %arg2: memref<1xi32, #tpu.memory_space<smem>>) -> (i32, i32, i32) {
    %c0_i32 = arith.constant 0 : i32
    %c0_i32_0 = arith.constant 0 : i32
    return %arg1, %arg0, %c0_i32 : i32, i32, i32
  }
  func.func @transform_1(%arg0: i32, %arg1: i32, %arg2: memref<1xi32, #tpu.memory_space<smem>>) -> (i32, i32, i32) {
    %c0_i32 = arith.constant 0 : i32
    %c0_i32_0 = arith.constant 0 : i32
    %c0_i32_1 = arith.constant 0 : i32
    return %c0_i32, %arg0, %c0_i32_0 : i32, i32, i32
  }
  func.func @transform_2(%arg0: i32, %arg1: i32, %arg2: memref<1xi32, #tpu.memory_space<smem>>) -> (i32, i32, i32) {
    %c0_i32 = arith.constant 0 : i32
    %c0_i32_0 = arith.constant 0 : i32
    return %arg1, %arg0, %c0_i32 : i32, i32, i32
  }
}

</mosaic_0001>

<bundles_post_ra>
// kernel: tpu_custom_call.1
= control target key start
LH: loop header
LB: loop body
LE: loop exit
PB: predicated region body
PF: predicated region fallthrough
CT: control target
= control target key end

     0   :  { %9 = vsyncpa [#allocation5], 0  ;;  %s161_s0 = inlined_call_operand.<no memory space> [shape: s32[1], index: 0, kind: input, shape index: {}]   ;;  %s162_s1 = inlined_call_operand.hbm [shape: f32[2,2,128], index: 1, kind: input, shape index: {}]   ;;  %s163_s2 = inlined_call_operand.vmem [shape: f32[1,2,128], index: 2, kind: input, shape index: {}]   ;;  %s164_s3 = inlined_call_operand.hbm [shape: f32[2,2,128], index: 3, kind: output, shape index: {}]  }
   0x1   :  { %10 = vsyncpa [#allocation6], 0  ;;  %s104_s12 = smov [#allocation4]   ;;  %s56_s16 = scalar_lea.hbm %s162_s1, 64 }
   0x2   :  { %s16_s13 = sshll.u32 %s104_s12, 4  ;;  %p57_p0 = scmp.ne.s32.totalorder %s162_s1, %s56_s16  ;;  %s17_s13 = int_to_ptr.vmem [resolvable:$true] %s16_s13 }
   0x3   :  { %p60_p1 = scmp.lt.u32.totalorder %s56_s16, %s162_s1 }
   0x5   :  { %p62_p2 = pnand %p60_p1, %p57_p0 }
   0x7   :  { %65 = shalt.err (!%p62_p2)
}
   0x8   :  { %s66_s20 = scalar_lea.vmem %s17_s13, 64  ;;  %p71_p4 = scmp.lt.s32.totalorder %s17_s13, %s17_s13 }
   0x9   :  { %p67_p3 = scmp.ne.s32.totalorder %s17_s13, %s66_s20  ;;  %p72_p5 = scmp.lt.s32.totalorder %s66_s20, %s66_s20 }
   0xb   :  { %p73_p6 = por %p72_p5, %p71_p4 }
   0xd   :  { %p74_p7 = pnand %p73_p6, %p67_p3 }
   0xf   :  { %77 = shalt.err (!%p74_p7)
}
  0x10   :  { %s105_s21 = smov 32   ;;  %s106_s22 = smov 2  }
  0x11   :  { %22 = dma.hbm_to_vmem [thread:$0]  %s162_s1, 64, %s17_s13, [#allocation5], %s105_s21, %s105_s21, %s106_s22  }
  0x12   :  { %100 = dma.done.wait [#allocation5], 64  }
  0x13   :  { %101 = vsyncadd [#allocation5], 4294967232  ;;  %s107_s25 = smov [#allocation7]   ;;  %v28_v0 = vld [vmem:[#allocation4] sm:$0x3] }
  0x14   :  { %s40_s26 = sshll.u32 %s107_s25, 4  ;;  %v30_v1 = vld [vmem:[%s163_s2] sm:$0x3]  ;;  %v29_v2 = vld [vmem:[#allocation4 + $0x2] sm:$0x3]  ;;  %s41_s26 = int_to_ptr.vmem [resolvable:$true] %s40_s26 }
  0x15   :  { %v31_v3 = vadd.f32 %v30_v1, %v28_v0  ;;  %v32_v4 = vadd.f32 %v30_v1, %v29_v2  ;;  %s78_s29 = scalar_lea.vmem %s41_s26, 64  ;;  %p83_p9 = scmp.lt.s32.totalorder %s41_s26, %s41_s26 }
  0x16   :  { %p79_p8 = scmp.ne.s32.totalorder %s41_s26, %s78_s29  ;;  %p84_p10 = scmp.lt.s32.totalorder %s78_s29, %s78_s29 }
  0x17   :  { %33 = vst [vmem:[#allocation7] sm:$0x3] %v31_v3  ;;  %34 = vst [vmem:[#allocation7 + $0x2] sm:$0x3] %v32_v4 }
  0x18   :  { %p85_p11 = por %p84_p10, %p83_p9 }
  0x1a   :  { %p86_p12 = pnand %p85_p11, %p79_p8 }
  0x1c   :  { %89 = shalt.err (!%p86_p12)
}
  0x1d   :  { %s90_s4 = scalar_lea.hbm %s164_s3, 64 }
  0x1e   :  { %p91_p13 = scmp.ne.s32.totalorder %s164_s3, %s90_s4  ;;  %p94_p0 = scmp.lt.u32.totalorder %s90_s4, %s164_s3 }
  0x20   :  { %p96_p1 = pnand %p94_p0, %p91_p13 }
  0x22   :  { %99 = shalt.err (!%p96_p1)
}
  0x23   :  { %46 = dma.vmem_to_hbm [thread:$0]  %s41_s26, 64, %s164_s3, [#allocation6], %s105_s21, %s105_s21, %s106_s22  }
  0x24   :  { %102 = dma.done.wait [#allocation6], 64  }
  0x25   :  { %103 = vsyncadd [#allocation6], 4294967232 }
  0x26   :  { %50 = vsyncpa [#allocation5], 1 }
  0x27   :  { %51 = vsyncpa [#allocation6], 1 }

</bundles_post_ra>
